<compile_context>
chip_gen: v7x
topology: tpu7x:2x2x1
jax: 0.10.0
libtpu: 0.0.40
codegen_flags: <defaults>
</compile_context>

<pallas_src>
import jax
import jax.numpy as jnp
from jax import lax
from jax.experimental import pallas as pl
from jax.experimental.pallas import tpu as pltpu

_SELU_ALPHA = 1.6732632423543772848170429916717
_SELU_SCALE = 1.0507009873554804934193349852946


def _round_up(x, m):
    return (x + m - 1) // m * m


def _matmul_bias_selu_kernel(a_ref, w_ref, b_ref, o_ref):
    # Single MXU matmul; f32 accumulation stays in vregs (no scratch RMW).
    y = jnp.dot(a_ref[...], w_ref[...], preferred_element_type=jnp.float32)
    y = y + b_ref[...]
    o_ref[...] = (_SELU_SCALE *
                  jnp.where(y > 0.0, y, _SELU_ALPHA * (jnp.exp(y) - 1.0))
                  ).astype(o_ref.dtype)


def _matmul_bias_selu(a, w, b, *, compute_dtype=jnp.float32, target_blocks=2):
    """SELU(a @ w + b) as one lane-dense Pallas matmul per M-tile.

    a: [M, K], w: [K, Nc], b: [Nc]  ->  f32 [M, Nc]
    """
    M, K = a.shape
    Nc = w.shape[1]
    a = a.astype(compute_dtype)
    w = w.astype(compute_dtype)

    # Lane-dense zero-padding of the contraction / output-channel dims.
    Kp = _round_up(K, 128)
    Np = _round_up(Nc, 128)
    a = jnp.pad(a, ((0, 0), (0, Kp - K)))
    w = jnp.pad(w, ((0, Kp - K), (0, Np - Nc)))
    b2 = jnp.pad(b.astype(jnp.float32), (0, Np - Nc)).reshape(1, Np)

    # Batch folded into M; small parallel grid over M tiles (v7x: both TCs).
    tm = _round_up(max(1, -(-M // target_blocks)), 16)
    nblk = -(-M // tm)
    Mp = nblk * tm
    a = jnp.pad(a, ((0, Mp - M), (0, 0)))

    out = pl.pallas_call(
        _matmul_bias_selu_kernel,
        out_shape=jax.ShapeDtypeStruct((Mp, Np), jnp.float32),
        grid_spec=pltpu.PrefetchScalarGridSpec(
            num_scalar_prefetch=0,
            grid=(nblk,),
            in_specs=[
                pl.BlockSpec((tm, Kp), lambda i: (i, 0)),
                pl.BlockSpec((Kp, Np), lambda i: (0, 0)),
                pl.BlockSpec((1, Np), lambda i: (0, 0)),
            ],
            out_specs=pl.BlockSpec((tm, Np), lambda i: (i, 0)),
        ),
        compiler_params=pltpu.CompilerParams(
            dimension_semantics=("parallel",),
            vmem_limit_bytes=32 * 1024 * 1024),
    )(a, w, b2)
    return out[:M, :Nc]


def _deconv_selu_phase(x, w_pt, b, *, k, p, op, compute_dtype):
    """SELU(ConvTranspose2d(k, stride=k, padding=p, output_padding=op)).

    Valid when stride == kernel and op <= p: each input pixel owns a disjoint
    k x k output block, so the layer is one matmul + depth-to-space + crop.
    """
    N, Hin, Win, Cin = x.shape
    Cout = w_pt.shape[1]
    Hout = (Hin - 1) * k - 2 * p + k + op
    Wout = (Win - 1) * k - 2 * p + k + op
    # columns ordered (ky, kx, co)
    wm = jnp.transpose(w_pt, (0, 2, 3, 1)).reshape(Cin, k * k * Cout)
    bm = jnp.tile(b, k * k)
    g = _matmul_bias_selu(x.reshape(N * Hin * Win, Cin), wm, bm,
                          compute_dtype=compute_dtype)
    y_full = (g.reshape(N, Hin, Win, k, k, Cout)
               .transpose(0, 1, 3, 2, 4, 5)
               .reshape(N, k * Hin, k * Win, Cout))
    return y_full[:, p:p + Hout, p:p + Wout, :]


def _deconv_selu_im2col(x, w_pt, b, *, k, s, p, op, compute_dtype):
    """General SELU(ConvTranspose2d): zero-dilate + pad + im2col in the wrapper,
    one lane-dense Pallas matmul for the compute."""
    N, Hin, Win, Cin = x.shape
    Cout = w_pt.shape[1]
    Hout = (Hin - 1) * s - 2 * p + k + op
    Wout = (Win - 1) * s - 2 * p + k + op
    Hd, Wd = (Hin - 1) * s + 1, (Win - 1) * s + 1
    xd = jnp.zeros((N, Hd, Wd, Cin), x.dtype).at[:, ::s, ::s, :].set(x)
    lo, hi = k - 1 - p, k - 1 - p + op
    xdp = jnp.pad(xd, ((0, 0), (lo, hi), (lo, hi), (0, 0)))
    # im2col, patch-major (ky, kx, ci)
    cols = [xdp[:, ky:ky + Hout, kx:kx + Wout, :]
            for ky in range(k) for kx in range(k)]
    a = jnp.concatenate(cols, axis=-1).reshape(N * Hout * Wout, k * k * Cin)
    # flipped kernel rows ordered (ky, kx, ci)
    wf = jnp.transpose(w_pt[:, :, ::-1, ::-1], (2, 3, 0, 1)).reshape(k * k * Cin, Cout)
    y = _matmul_bias_selu(a, wf, b, compute_dtype=compute_dtype)
    return y.reshape(N, Hout, Wout, Cout)


def mscred_decoder(conv1_lstm_out, conv2_lstm_out, conv3_lstm_out, conv4_lstm_out,
                   params, *, compute_dtype=jnp.float32):
    """MSCREDDecoder.forward.  Inputs NHWC; params = ((w4,b4),(w3,b3),(w2,b2),(w1,b1))
    with PyTorch ConvTranspose2d weight layout [Cin, Cout, kH, kW]."""
    (w4, b4), (w3, b3), (w2, b2), (w1, b1) = params
    d4 = _deconv_selu_phase(conv4_lstm_out, w4, b4, k=2, p=0, op=0,
                            compute_dtype=compute_dtype)
    d4c = jnp.concatenate([d4, conv3_lstm_out], axis=-1)
    d3 = _deconv_selu_phase(d4c, w3, b3, k=2, p=1, op=1,
                            compute_dtype=compute_dtype)
    d3c = jnp.concatenate([d3, conv2_lstm_out], axis=-1)
    d2 = _deconv_selu_im2col(d3c, w2, b2, k=3, s=2, p=1, op=1,
                             compute_dtype=compute_dtype)
    d2c = jnp.concatenate([d2, conv1_lstm_out], axis=-1)
    d1 = _deconv_selu_im2col(d2c, w1, b1, k=3, s=1, p=1, op=0,
                             compute_dtype=compute_dtype)
    return d1


def _reference(conv1, conv2, conv3, conv4, params):
    """Pure-JAX reference matching the PyTorch forward (NHWC)."""
    def deconv(x, w, b, k, s, p, op):
        wf = jnp.transpose(w[:, :, ::-1, ::-1], (2, 3, 0, 1))   # HWIO of flipped kernel
        y = lax.conv_general_dilated(
            x, wf, window_strides=(1, 1),
            padding=[(k - 1 - p, k - 1 - p + op), (k - 1 - p, k - 1 - p + op)],
            lhs_dilation=(s, s),
            dimension_numbers=('NHWC', 'HWIO', 'NHWC'),
            precision=lax.Precision.HIGHEST)
        return jax.nn.selu(y + b)

    (w4, b4), (w3, b3), (w2, b2), (w1, b1) = params
    d4 = deconv(conv4, w4, b4, 2, 2, 0, 0)
    d3 = deconv(jnp.concatenate([d4, conv3], -1), w3, b3, 2, 2, 1, 1)
    d2 = deconv(jnp.concatenate([d3, conv2], -1), w2, b2, 3, 2, 1, 1)
    d1 = deconv(jnp.concatenate([d2, conv1], -1), w1, b1, 3, 1, 1, 0)
    return d1


if __name__ == "__main__":
    key = jax.random.PRNGKey(0)
    ks = jax.random.split(key, 16)
    N = 2
    # MSCRED channel plan: decoder in_channels = 256, skips have 128/64/32 ch.
    conv4 = jax.random.normal(ks[0], (N, 2, 2, 256), jnp.float32)      # conv4_lstm_out
    conv3 = jax.random.normal(ks[1], (N, 4, 4, 128), jnp.float32)      # conv3_lstm_out
    conv2 = jax.random.normal(ks[2], (N, 7, 7, 64), jnp.float32)       # conv2_lstm_out
    conv1 = jax.random.normal(ks[3], (N, 14, 14, 32), jnp.float32)     # conv1_lstm_out

    def mk(kk, cin, cout, k):
        bound = 1.0 / (cout * k * k) ** 0.5
        w = jax.random.uniform(kk[0], (cin, cout, k, k), jnp.float32, -bound, bound)
        b = jax.random.uniform(kk[1], (cout,), jnp.float32, -bound, bound)
        return w, b

    p4 = mk(ks[4:6], 256, 128, 2)     # ConvTranspose2d(256, 128, 2, 2, 0, 0)
    p3 = mk(ks[6:8], 256, 64, 2)      # ConvTranspose2d(256,  64, 2, 2, 1, 1)
    p2 = mk(ks[8:10], 128, 32, 3)     # ConvTranspose2d(128,  32, 3, 2, 1, 1)
    p1 = mk(ks[10:12], 64, 3, 3)      # ConvTranspose2d( 64,   3, 3, 1, 1, 0)
    params = (p4, p3, p2, p1)

    out = mscred_decoder(conv1, conv2, conv3, conv4, params)
    jax.block_until_ready(out)
    assert out.shape == (N, 14, 14, 3), out.shape

    ref = _reference(conv1, conv2, conv3, conv4, params)
    assert jnp.allclose(out, ref, atol=1e-4, rtol=1e-4), "f32 output mismatch"

    # bf16 MXU path (v6e/v7x fast path; accumulation stays f32) — looser check.
    out_bf16 = mscred_decoder(conv1, conv2, conv3, conv4, params,
                              compute_dtype=jnp.bfloat16)
    jax.block_until_ready(out_bf16)
    assert jnp.allclose(out_bf16, ref, atol=1e-1, rtol=1e-1), "bf16 output mismatch"

    print("KERNEL_OK")
</pallas_src>

<mosaic_0001>
module attributes {stable_mosaic.version = 11 : i64} {
  func.func @_matmul_bias_selu_kernel(%arg0: i32, %arg1: memref<16x256xf32, #tpu.memory_space<vmem>>, %arg2: memref<256x512xf32, #tpu.memory_space<vmem>>, %arg3: memref<1x512xf32, #tpu.memory_space<vmem>>, %arg4: memref<16x512xf32, #tpu.memory_space<vmem>>) attributes {dimension_semantics = [#tpu.dimension_semantics<parallel>], iteration_bounds = array<i64: 1>, scalar_prefetch = 0 : i64, scratch_operands = 0 : i64, tpu.core_type = #tpu.core_type<tc>, window_params = [{transform_indices = @transform_0, window_bounds = array<i64: 16, 256>}, {pipeline_mode = #tpu.pipeline_mode<synchronous>, transform_indices = @transform_1, window_bounds = array<i64: 256, 512>}, {pipeline_mode = #tpu.pipeline_mode<synchronous>, transform_indices = @transform_2, window_bounds = array<i64: 1, 512>}, {transform_indices = @transform_3, window_bounds = array<i64: 16, 512>}]} {
    %c0 = arith.constant 0 : index
    %c0_0 = arith.constant 0 : index
    %0 = vector.load %arg1[%c0, %c0_0] : memref<16x256xf32, #tpu.memory_space<vmem>>, vector<16x256xf32>
    %c0_1 = arith.constant 0 : index
    %c0_2 = arith.constant 0 : index
    %1 = vector.load %arg2[%c0_1, %c0_2] : memref<256x512xf32, #tpu.memory_space<vmem>>, vector<256x512xf32>
    %cst = arith.constant dense<0.000000e+00> : vector<16x512xf32>
    %2 = tpu.matmul %0, %1, %cst {dimension_numbers = #tpu.dot_dimension_numbers<[1], [0], [0], [1], [0, 0, 1, 1], [], []>} : vector<16x256xf32>, vector<256x512xf32>, vector<16x512xf32> -> vector<16x512xf32>
    %c0_3 = arith.constant 0 : index
    %c0_4 = arith.constant 0 : index
    %3 = vector.load %arg3[%c0_3, %c0_4] : memref<1x512xf32, #tpu.memory_space<vmem>>, vector<1x512xf32>
    %4 = vector.broadcast %3 : vector<1x512xf32> to vector<16x512xf32>
    %5 = arith.addf %2, %4 : vector<16x512xf32>
    %cst_5 = arith.constant 0.000000e+00 : f32
    %6 = vector.broadcast %cst_5 : f32 to vector<16x512xf32>
    %7 = arith.cmpf ogt, %5, %6 : vector<16x512xf32>
    %8 = math.exp %5 : vector<16x512xf32>
    %cst_6 = arith.constant 1.000000e+00 : f32
    %9 = vector.broadcast %cst_6 : f32 to vector<16x512xf32>
    %10 = arith.subf %8, %9 : vector<16x512xf32>
    %cst_7 = arith.constant 1.67326319 : f32
    %11 = vector.broadcast %cst_7 : f32 to vector<16x512xf32>
    %12 = arith.mulf %11, %10 : vector<16x512xf32>
    %13 = arith.select %7, %5, %12 : vector<16x512xi1>, vector<16x512xf32>
    %cst_8 = arith.constant 1.05070102 : f32
    %14 = vector.broadcast %cst_8 : f32 to vector<16x512xf32>
    %15 = arith.mulf %14, %13 : vector<16x512xf32>
    %c0_9 = arith.constant 0 : index
    %c0_10 = arith.constant 0 : index
    %16 = vector.load %arg4[%c0_9, %c0_10] : memref<16x512xf32, #tpu.memory_space<vmem>>, vector<16x512xf32>
    tpu.vector_store %arg4[%c0_9, %c0_10], %15 {strides = array<i32>} : memref<16x512xf32, #tpu.memory_space<vmem>>, vector<16x512xf32>,
    return
  }
  func.func @transform_0(%arg0: i32) -> (i32, i32) {
    %c0_i32 = arith.constant 0 : i32
    %c0_i32_0 = arith.constant 0 : i32
    return %arg0, %c0_i32 : i32, i32
  }
  func.func @transform_1(%arg0: i32) -> (i32, i32) {
    %c0_i32 = arith.constant 0 : i32
    %c0_i32_0 = arith.constant 0 : i32
    %c0_i32_1 = arith.constant 0 : i32
    return %c0_i32, %c0_i32_0 : i32, i32
  }
  func.func @transform_2(%arg0: i32) -> (i32, i32) {
    %c0_i32 = arith.constant 0 : i32
    %c0_i32_0 = arith.constant 0 : i32
    %c0_i32_1 = arith.constant 0 : i32
    return %c0_i32, %c0_i32_0 : i32, i32
  }
  func.func @transform_3(%arg0: i32) -> (i32, i32) {
    %c0_i32 = arith.constant 0 : i32
    %c0_i32_0 = arith.constant 0 : i32
    return %arg0, %c0_i32 : i32, i32
  }
}

</mosaic_0001>

<bundles_post_ra>
// kernel: tpu_custom_call.1
= control target key start
LH: loop header
LB: loop body
LE: loop exit
PB: predicated region body
PF: predicated region fallthrough
CT: control target
= control target key end

     0   :  { %8 = vsyncpa [#allocation3], 0  ;;  %s741_s0 = inlined_call_operand.hbm [shape: f32[16,256], index: 0, kind: input, shape index: {}]   ;;  %s742_s1 = inlined_call_operand.hbm [shape: f32[256,512], index: 1, kind: input, shape index: {}]   ;;  %s743_s2 = inlined_call_operand.vmem [shape: f32[1,512], index: 2, kind: input, shape index: {}]   ;;  %s744_s3 = inlined_call_operand.hbm [shape: f32[16,512], index: 3, kind: output, shape index: {}]  }
   0x1   :  { %9 = vsyncpa [#allocation6], 0 }
   0x2   :  { %10 = vsyncpa [#allocation4], 0  ;;  %s664_s12 = smov [#allocation2]   ;;  %s592_s16 = scalar_lea.hbm %s741_s0, 512 }
   0x3   :  { %s16_s13 = sshll.u32 %s664_s12, 4  ;;  %p593_p0 = scmp.ne.s32.totalorder %s741_s0, %s592_s16  ;;  %s17_s13 = int_to_ptr.vmem [resolvable:$true] %s16_s13 }
   0x4   :  { %p596_p1 = scmp.lt.u32.totalorder %s592_s16, %s741_s0 }
   0x6   :  { %p598_p2 = pnand %p596_p1, %p593_p0 }
   0x8   :  { %601 = shalt.err (!%p598_p2)
}
   0x9   :  { %s602_s21 = scalar_lea.vmem %s17_s13, 512  ;;  %p607_p4 = scmp.lt.s32.totalorder %s17_s13, %s17_s13 }
   0xa   :  { %p603_p3 = scmp.ne.s32.totalorder %s17_s13, %s602_s21  ;;  %p608_p5 = scmp.lt.s32.totalorder %s602_s21, %s602_s21 }
   0xc   :  { %p609_p6 = por %p608_p5, %p607_p4 }
   0xe   :  { %p610_p7 = pnand %p609_p6, %p603_p3 }
  0x10   :  { %613 = shalt.err (!%p610_p7)
}
  0x11   :  { %s665_s22 = smov 256   ;;  %s666_s23 = smov 16  }
  0x12   :  { %22 = dma.hbm_to_vmem [thread:$0]  %s741_s0, 512, %s17_s13, [#allocation3], %s665_s22, %s665_s22, %s666_s23  }
  0x13   :  { %s667_s26 = smov [#allocation5]   ;;  %s614_s30 = scalar_lea.hbm %s742_s1, 16384 }
  0x14   :  { %s28_s27 = sshll.u32 %s667_s26, 4  ;;  %p615_p8 = scmp.ne.s32.totalorder %s742_s1, %s614_s30  ;;  %s29_s27 = int_to_ptr.vmem [resolvable:$true] %s28_s27 }
  0x15   :  { %p618_p9 = scmp.lt.u32.totalorder %s614_s30, %s742_s1 }
  0x17   :  { %p620_p10 = pnand %p618_p9, %p615_p8 }
  0x19   :  { %623 = shalt.err (!%p620_p10)
}
  0x1a   :  { %s624_s8 = scalar_lea.vmem %s29_s27, 16384  ;;  %p629_p12 = scmp.lt.s32.totalorder %s29_s27, %s29_s27 }
  0x1b   :  { %p625_p11 = scmp.ne.s32.totalorder %s29_s27, %s624_s8  ;;  %p630_p13 = scmp.lt.s32.totalorder %s624_s8, %s624_s8 }
  0x1d   :  { %p631_p0 = por %p630_p13, %p629_p12 }
  0x1f   :  { %p632_p1 = pnand %p631_p0, %p625_p11 }
  0x21   :  { %635 = shalt.err (!%p632_p1)
}
  0x22   :  { %s668_s0 = smov 512   ;;  %s669_s9 = smov 32  }
  0x23   :  { %34 = dma.hbm_to_vmem [thread:$0]  %s742_s1, 16384, %s29_s27, [#allocation6], %s668_s0, %s668_s0, %s669_s9  }
  0x24   :  { %658 = dma.done.wait [#allocation3], 512  }
  0x25   :  { %659 = vsyncadd [#allocation3], 4294966784 }
  0x26   :  { %660 = dma.done.wait [#allocation6], 16384  }
  0x27   :  { %661 = vsyncadd [#allocation6], 4294950912  ;;  %v48_v0 = vld [vmem:[#allocation5 + $0x8] sm:$0xff]  ;;  %v50_v2 = vld [vmem:[#allocation5 + $0x18] sm:$0xff] }
  0x28   :  { %v52_v1 = vld [vmem:[#allocation5 + $0x28] sm:$0xff]  ;;  %v54_v4 = vld [vmem:[#allocation5 + $0x38] sm:$0xff]  ;;  %v47_v5 = vld [vmem:[#allocation5] sm:$0xff] }
  0x29   :  { %v441_v3 = vpack.c.bf16 %v52_v1, %v48_v0  ;;  %v51_v6 = vld [vmem:[#allocation5 + $0x20] sm:$0xff]  ;;  %v505_v7 = vpack.c.bf16 %v54_v4, %v50_v2  ;;  %v49_v9 = vld [vmem:[#allocation5 + $0x10] sm:$0xff]  ;;  %v56_v11 = vld [vmem:[#allocation5 + $0x48] sm:$0xff] }
  0x2a   :  { %v443_v8 = vpack.c.bf16 %v51_v6, %v47_v5  ;;  %v53_v10 = vld [vmem:[#allocation5 + $0x30] sm:$0xff]  ;;  %v60_v13 = vld [vmem:[#allocation5 + $0x68] sm:$0xff]  ;;  %v58_v14 = vld [vmem:[#allocation5 + $0x58] sm:$0xff] }
  0x2b   :  { %442 = vmatprep.subr.bf16.mxu0 %v441_v3  ;;  %v507_v12 = vpack.c.bf16 %v53_v10, %v49_v9  ;;  %v62_v15 = vld [vmem:[#allocation5 + $0x78] sm:$0xff]  ;;  %506 = vmatprep.subr.bf16.mxu1 %v505_v7  ;;  %v445_v16 = vpack.c.bf16 %v60_v13, %v56_v11  ;;  %v55_v18 = vld [vmem:[#allocation5 + $0x40] sm:$0xff]  ;;  %v57_v20 = vld [vmem:[#allocation5 + $0x50] sm:$0xff] }
  0x2c   :  { %444 = vmatpush1.bf16.msra.mxu0 %v443_v8  ;;  %v509_v17 = vpack.c.bf16 %v62_v15, %v58_v14  ;;  %v59_v19 = vld [vmem:[#allocation5 + $0x60] sm:$0xff]  ;;  %v61_v22 = vld [vmem:[#allocation5 + $0x70] sm:$0xff]  ;;  %v64_v23 = vld [vmem:[#allocation5 + $0x88] sm:$0xff] }
  0x2d   :  { %508 = vmatpush1.bf16.msra.mxu1 %v507_v12  ;;  %v447_v21 = vpack.c.bf16 %v59_v19, %v55_v18  ;;  %v68_v24 = vld [vmem:[#allocation5 + $0xa8] sm:$0xff]  ;;  %446 = vmatprep.subr.bf16.mxu0 %v445_v16  ;;  %v511_v25 = vpack.c.bf16 %v61_v22, %v57_v20  ;;  %v66_v27 = vld [vmem:[#allocation5 + $0x98] sm:$0xff]  ;;  %v63_v29 = vld [vmem:[#allocation5 + $0x80] sm:$0xff] }
  0x2e   :  { %510 = vmatprep.subr.bf16.mxu1 %v509_v17  ;;  %v449_v26 = vpack.c.bf16 %v68_v24, %v64_v23  ;;  %v70_v28 = vld [vmem:[#allocation5 + $0xb8] sm:$0xff]  ;;  %v67_v31 = vld [vmem:[#allocation5 + $0xa0] sm:$0xff]  ;;  %v65_v32 = vld [vmem:[#allocation5 + $0x90] sm:$0xff] }
  0x2f   :  { %v513_v30 = vpack.c.bf16 %v70_v28, %v66_v27  ;;  %v69_v33 = vld [vmem:[#allocation5 + $0xb0] sm:$0xff]  ;;  %v451_v34 = vpack.c.bf16 %v67_v31, %v63_v29  ;;  %v72_v35 = vld [vmem:[#allocation5 + $0xc8] sm:$0xff]  ;;  %v74_v37 = vld [vmem:[#allocation5 + $0xd8] sm:$0xff] }
  0x30   :  { %448 = vmatpush1.bf16.msra.mxu0 %v447_v21  ;;  %v76_v36 = vld [vmem:[#allocation5 + $0xe8] sm:$0xff]  ;;  %v515_v38 = vpack.c.bf16 %v69_v33, %v65_v32  ;;  %v78_v40 = vld [vmem:[#allocation5 + $0xf8] sm:$0xff]  ;;  %v71_v41 = vld [vmem:[#allocation5 + $0xc0] sm:$0xff] }
  0x31   :  { %512 = vmatpush1.bf16.msra.mxu1 %v511_v25  ;;  %450 = vmatprep.subr.bf16.mxu0 %v449_v26  ;;  %v453_v39 = vpack.c.bf16 %v76_v36, %v72_v35  ;;  %v75_v42 = vld [vmem:[#allocation5 + $0xe0] sm:$0xff]  ;;  %v517_v43 = vpack.c.bf16 %v78_v40, %v74_v37  ;;  %v73_v44 = vld [vmem:[#allocation5 + $0xd0] sm:$0xff]  ;;  %v80_v46 = vld [vmem:[#allocation5 + $0x108] sm:$0xff] }
  0x32   :  { %514 = vmatprep.subr.bf16.mxu1 %v513_v30  ;;  %v77_v45 = vld [vmem:[#allocation5 + $0xf0] sm:$0xff]  ;;  %v84_v47 = vld [vmem:[#allocation5 + $0x128] sm:$0xff]  ;;  %v82_v48 = vld [vmem:[#allocation5 + $0x118] sm:$0xff]  ;;  %v455_v50 = vpack.c.bf16 %v75_v42, %v71_v41 }
  0x33   :  { %v86_v49 = vld [vmem:[#allocation5 + $0x138] sm:$0xff]  ;;  %v519_v51 = vpack.c.bf16 %v77_v45, %v73_v44  ;;  %v457_v52 = vpack.c.bf16 %v84_v47, %v80_v46  ;;  %v79_v53 = vld [vmem:[#allocation5 + $0x100] sm:$0xff]  ;;  %v81_v55 = vld [vmem:[#allocation5 + $0x110] sm:$0xff] }
  0x34   :  { %452 = vmatpush1.bf16.msra.mxu0 %v451_v34  ;;  %v83_v54 = vld [vmem:[#allocation5 + $0x120] sm:$0xff]  ;;  %v521_v56 = vpack.c.bf16 %v86_v49, %v82_v48  ;;  %v85_v57 = vld [vmem:[#allocation5 + $0x130] sm:$0xff]  ;;  %v88_v58 = vld [vmem:[#allocation5 + $0x148] sm:$0xff] }
  0x35   :  { %516 = vmatpush1.bf16.msra.mxu1 %v515_v38  ;;  %454 = vmatprep.subr.bf16.mxu0 %v453_v39  ;;  %v92_v59 = vld [vmem:[#allocation5 + $0x168] sm:$0xff]  ;;  %v90_v60 = vld [vmem:[#allocation5 + $0x158] sm:$0xff]  ;;  %v459_v62 = vpack.c.bf16 %v83_v54, %v79_v53  ;;  %v523_v63 = vpack.c.bf16 %v85_v57, %v81_v55  ;;  %v87_v1 = vld [vmem:[#allocation5 + $0x140] sm:$0xff] }
  0x36   :  { %518 = vmatprep.subr.bf16.mxu1 %v517_v43  ;;  %v94_v61 = vld [vmem:[#allocation5 + $0x178] sm:$0xff]  ;;  %v461_v0 = vpack.c.bf16 %v92_v59, %v88_v58  ;;  %v91_v2 = vld [vmem:[#allocation5 + $0x160] sm:$0xff]  ;;  %v89_v3 = vld [vmem:[#allocation5 + $0x150] sm:$0xff] }
  0x37   :  { %v525_v4 = vpack.c.bf16 %v94_v61, %v90_v60  ;;  %v93_v5 = vld [vmem:[#allocation5 + $0x170] sm:$0xff]  ;;  %v96_v6 = vld [vmem:[#allocation5 + $0x188] sm:$0xff]  ;;  %v98_v8 = vld [vmem:[#allocation5 + $0x198] sm:$0xff]  ;;  %v463_v10 = vpack.c.bf16 %v91_v2, %v87_v1 }
  0x38   :  { %456 = vmatpush1.bf16.msra.mxu0 %v455_v50  ;;  %v100_v7 = vld [vmem:[#allocation5 + $0x1a8] sm:$0xff]  ;;  %v102_v9 = vld [vmem:[#allocation5 + $0x1b8] sm:$0xff]  ;;  %v527_v11 = vpack.c.bf16 %v93_v5, %v89_v3  ;;  %v95_v13 = vld [vmem:[#allocation5 + $0x180] sm:$0xff] }
  0x39   :  { %520 = vmatpush1.bf16.msra.mxu1 %v519_v51  ;;  %458 = vmatprep.subr.bf16.mxu0 %v457_v52  ;;  %v465_v12 = vpack.c.bf16 %v100_v7, %v96_v6  ;;  %v99_v14 = vld [vmem:[#allocation5 + $0x1a0] sm:$0xff]  ;;  %v97_v15 = vld [vmem:[#allocation5 + $0x190] sm:$0xff]  ;;  %v529_v16 = vpack.c.bf16 %v102_v9, %v98_v8  ;;  %v104_v18 = vld [vmem:[#allocation5 + $0x1c8] sm:$0xff] }
  0x3a   :  { %522 = vmatprep.subr.bf16.mxu1 %v521_v56  ;;  %v101_v17 = vld [vmem:[#allocation5 + $0x1b0] sm:$0xff]  ;;  %v108_v19 = vld [vmem:[#allocation5 + $0x1e8] sm:$0xff]  ;;  %v106_v20 = vld [vmem:[#allocation5 + $0x1d8] sm:$0xff]  ;;  %v467_v22 = vpack.c.bf16 %v99_v14, %v95_v13 }
  0x3b   :  { %v110_v21 = vld [vmem:[#allocation5 + $0x1f8] sm:$0xff]  ;;  %v531_v23 = vpack.c.bf16 %v101_v17, %v97_v15  ;;  %v469_v24 = vpack.c.bf16 %v108_v19, %v104_v18  ;;  %v103_v25 = vld [vmem:[#allocation5 + $0x1c0] sm:$0xff]  ;;  %v105_v27 = vld [vmem:[#allocation5 + $0x1d0] sm:$0xff] }
  0x3c   :  { %460 = vmatpush1.bf16.msra.mxu0 %v459_v62  ;;  %v107_v26 = vld [vmem:[#allocation5 + $0x1e0] sm:$0xff]  ;;  %v533_v28 = vpack.c.bf16 %v110_v21, %v106_v20  ;;  %v109_v29 = vld [vmem:[#allocation5 + $0x1f0] sm:$0xff]  ;;  %v112_v30 = vld [vmem:[#allocation5 + $0x208] sm:$0xff] }
  0x3d   :  { %524 = vmatpush1.bf16.msra.mxu1 %v523_v63  ;;  %462 = vmatprep.subr.bf16.mxu0 %v461_v0  ;;  %v116_v31 = vld [vmem:[#allocation5 + $0x228] sm:$0xff]  ;;  %v114_v32 = vld [vmem:[#allocation5 + $0x218] sm:$0xff]  ;;  %v471_v34 = vpack.c.bf16 %v107_v26, %v103_v25  ;;  %v535_v35 = vpack.c.bf16 %v109_v29, %v105_v27  ;;  %v111_v37 = vld [vmem:[#allocation5 + $0x200] sm:$0xff] }
  0x3e   :  { %526 = vmatprep.subr.bf16.mxu1 %v525_v4  ;;  %v118_v33 = vld [vmem:[#allocation5 + $0x238] sm:$0xff]  ;;  %v473_v36 = vpack.c.bf16 %v116_v31, %v112_v30  ;;  %v115_v38 = vld [vmem:[#allocation5 + $0x220] sm:$0xff]  ;;  %v113_v39 = vld [vmem:[#allocation5 + $0x210] sm:$0xff] }
  0x3f   :  { %v537_v40 = vpack.c.bf16 %v118_v33, %v114_v32  ;;  %v117_v41 = vld [vmem:[#allocation5 + $0x230] sm:$0xff]  ;;  %v120_v42 = vld [vmem:[#allocation5 + $0x248] sm:$0xff]  ;;  %v122_v44 = vld [vmem:[#allocation5 + $0x258] sm:$0xff]  ;;  %v475_v46 = vpack.c.bf16 %v115_v38, %v111_v37 }
  0x40   :  { %464 = vmatpush1.bf16.msra.mxu0 %v463_v10  ;;  %v124_v43 = vld [vmem:[#allocation5 + $0x268] sm:$0xff]  ;;  %v126_v45 = vld [vmem:[#allocation5 + $0x278] sm:$0xff]  ;;  %v539_v47 = vpack.c.bf16 %v117_v41, %v113_v39  ;;  %v119_v49 = vld [vmem:[#allocation5 + $0x240] sm:$0xff] }
  0x41   :  { %528 = vmatpush1.bf16.msra.mxu1 %v527_v11  ;;  %466 = vmatprep.subr.bf16.mxu0 %v465_v12  ;;  %v477_v48 = vpack.c.bf16 %v124_v43, %v120_v42  ;;  %v123_v50 = vld [vmem:[#allocation5 + $0x260] sm:$0xff]  ;;  %v121_v51 = vld [vmem:[#allocation5 + $0x250] sm:$0xff]  ;;  %v541_v52 = vpack.c.bf16 %v126_v45, %v122_v44  ;;  %v128_v54 = vld [vmem:[#allocation5 + $0x288] sm:$0xff] }
  0x42   :  { %530 = vmatprep.subr.bf16.mxu1 %v529_v16  ;;  %v125_v53 = vld [vmem:[#allocation5 + $0x270] sm:$0xff]  ;;  %v132_v55 = vld [vmem:[#allocation5 + $0x2a8] sm:$0xff]  ;;  %v130_v56 = vld [vmem:[#allocation5 + $0x298] sm:$0xff]  ;;  %v479_v58 = vpack.c.bf16 %v123_v50, %v119_v49 }
  0x43   :  { %v134_v57 = vld [vmem:[#allocation5 + $0x2b8] sm:$0xff]  ;;  %v543_v59 = vpack.c.bf16 %v125_v53, %v121_v51  ;;  %v481_v60 = vpack.c.bf16 %v132_v55, %v128_v54  ;;  %v127_v61 = vld [vmem:[#allocation5 + $0x280] sm:$0xff]  ;;  %v129_v63 = vld [vmem:[#allocation5 + $0x290] sm:$0xff] }
  0x44   :  { %468 = vmatpush1.bf16.msra.mxu0 %v467_v22  ;;  %v131_v62 = vld [vmem:[#allocation5 + $0x2a0] sm:$0xff]  ;;  %v545_v0 = vpack.c.bf16 %v134_v57, %v130_v56  ;;  %v133_v1 = vld [vmem:[#allocation5 + $0x2b0] sm:$0xff]  ;;  %v136_v2 = vld [vmem:[#allocation5 + $0x2c8] sm:$0xff] }
  0x45   :  { %532 = vmatpush1.bf16.msra.mxu1 %v531_v23  ;;  %470 = vmatprep.subr.bf16.mxu0 %v469_v24  ;;  %v140_v3 = vld [vmem:[#allocation5 + $0x2e8] sm:$0xff]  ;;  %v138_v4 = vld [vmem:[#allocation5 + $0x2d8] sm:$0xff]  ;;  %v483_v6 = vpack.c.bf16 %v131_v62, %v127_v61  ;;  %v135_v7 = vld [vmem:[#allocation5 + $0x2c0] sm:$0xff]  ;;  %v547_v8 = vpack.c.bf16 %v133_v1, %v129_v63 }
  0x46   :  { %534 = vmatprep.subr.bf16.mxu1 %v533_v28  ;;  %v142_v5 = vld [vmem:[#allocation5 + $0x2f8] sm:$0xff]  ;;  %v485_v9 = vpack.c.bf16 %v140_v3, %v136_v2  ;;  %v139_v10 = vld [vmem:[#allocation5 + $0x2e0] sm:$0xff]  ;;  %v137_v11 = vld [vmem:[#allocation5 + $0x2d0] sm:$0xff] }
  0x47   :  { %v141_v12 = vld [vmem:[#allocation5 + $0x2f0] sm:$0xff]  ;;  %v549_v13 = vpack.c.bf16 %v142_v5, %v138_v4  ;;  %v144_v14 = vld [vmem:[#allocation5 + $0x308] sm:$0xff]  ;;  %v146_v17 = vld [vmem:[#allocation5 + $0x318] sm:$0xff]  ;;  %v487_v19 = vpack.c.bf16 %v139_v10, %v135_v7  ;;  %v177_v4 = vlaneseq }
  0x48   :  { %472 = vmatpush1.bf16.msra.mxu0 %v471_v34  ;;  %v148_v15 = vld [vmem:[#allocation5 + $0x328] sm:$0xff]  ;;  %v150_v18 = vld [vmem:[#allocation5 + $0x338] sm:$0xff]  ;;  %v551_v20 = vpack.c.bf16 %v141_v12, %v137_v11  ;;  %v143_v22 = vld [vmem:[#allocation5 + $0x300] sm:$0xff] }
  0x49   :  { %536 = vmatpush1.bf16.msra.mxu1 %v535_v35  ;;  %474 = vmatprep.subr.bf16.mxu0 %v473_v36  ;;  %v44_v16 = vld [vmem:[#allocation2 + $0x8] sm:$0xff]  ;;  %v489_v21 = vpack.c.bf16 %v148_v15, %v144_v14  ;;  %v147_v23 = vld [vmem:[#allocation5 + $0x320] sm:$0xff]  ;;  %v145_v24 = vld [vmem:[#allocation5 + $0x310] sm:$0xff]  ;;  %v553_v25 = vpack.c.bf16 %v150_v18, %v146_v17  ;;  %v178_v5 = vshrl.u32 %v177_v4, 7 }
  0x4a   :  { %538 = vmatprep.subr.bf16.mxu1 %v537_v40  ;;  %261 = vmatprep.mubr.f32.mxu0 %v44_v16  ;;  %v149_v26 = vld [vmem:[#allocation5 + $0x330] sm:$0xff]  ;;  %v152_v27 = vld [vmem:[#allocation5 + $0x348] sm:$0xff]  ;;  %v154_v29 = vld [vmem:[#allocation5 + $0x358] sm:$0xff]  ;;  %v491_v31 = vpack.c.bf16 %v147_v23, %v143_v22 }
  0x4b   :  { %338 = vmatprep.mubr.f32.mxu1 %v44_v16  ;;  %v156_v28 = vld [vmem:[#allocation5 + $0x368] sm:$0xff]  ;;  %v158_v30 = vld [vmem:[#allocation5 + $0x378] sm:$0xff]  ;;  %v555_v32 = vpack.c.bf16 %v149_v26, %v145_v24  ;;  %v151_v34 = vld [vmem:[#allocation5 + $0x340] sm:$0xff]  ;;  %v191_v10 = vsub.s32 3, %v178_v5 }
  0x4c   :  { %476 = vmatpush1.bf16.msra.mxu0 %v475_v46  ;;  %v493_v33 = vpack.c.bf16 %v156_v28, %v152_v27  ;;  %v155_v35 = vld [vmem:[#allocation5 + $0x360] sm:$0xff]  ;;  %v153_v36 = vld [vmem:[#allocation5 + $0x350] sm:$0xff]  ;;  %v557_v37 = vpack.c.bf16 %v158_v30, %v154_v29  ;;  %v160_v39 = vld [vmem:[#allocation5 + $0x388] sm:$0xff] }
  0x4d   :  { %540 = vmatpush1.bf16.msra.mxu1 %v539_v47  ;;  %478 = vmatprep.subr.bf16.mxu0 %v477_v48  ;;  %v157_v38 = vld [vmem:[#allocation5 + $0x370] sm:$0xff]  ;;  %v164_v40 = vld [vmem:[#allocation5 + $0x3a8] sm:$0xff]  ;;  %v162_v41 = vld [vmem:[#allocation5 + $0x398] sm:$0xff]  ;;  %v495_v43 = vpack.c.bf16 %v155_v35, %v151_v34 }
  0x4e   :  { %542 = vmatprep.subr.bf16.mxu1 %v541_v52  ;;  %v166_v42 = vld [vmem:[#allocation5 + $0x3b8] sm:$0xff]  ;;  %v559_v44 = vpack.c.bf16 %v157_v38, %v153_v36  ;;  %v497_v45 = vpack.c.bf16 %v164_v40, %v160_v39  ;;  %v159_v46 = vld [vmem:[#allocation5 + $0x380] sm:$0xff]  ;;  %v161_v48 = vld [vmem:[#allocation5 + $0x390] sm:$0xff] }
  0x4f   :  { %v163_v47 = vld [vmem:[#allocation5 + $0x3a0] sm:$0xff]  ;;  %v561_v49 = vpack.c.bf16 %v166_v42, %v162_v41  ;;  %v165_v50 = vld [vmem:[#allocation5 + $0x3b0] sm:$0xff]  ;;  %v168_v51 = vld [vmem:[#allocation5 + $0x3c8] sm:$0xff] }
  0x50   :  { %480 = vmatpush1.bf16.msra.mxu0 %v479_v58  ;;  %v172_v52 = vld [vmem:[#allocation5 + $0x3e8] sm:$0xff]  ;;  %v170_v53 = vld [vmem:[#allocation5 + $0x3d8] sm:$0xff]  ;;  %v499_v55 = vpack.c.bf16 %v163_v47, %v159_v46  ;;  %v563_v56 = vpack.c.bf16 %v165_v50, %v161_v48  ;;  %v167_v58 = vld [vmem:[#allocation5 + $0x3c0] sm:$0xff] }
  0x51   :  { %544 = vmatpush1.bf16.msra.mxu1 %v543_v59  ;;  %482 = vmatprep.subr.bf16.mxu0 %v481_v60  ;;  %v174_v54 = vld [vmem:[#allocation5 + $0x3f8] sm:$0xff]  ;;  %v501_v57 = vpack.c.bf16 %v172_v52, %v168_v51  ;;  %v171_v59 = vld [vmem:[#allocation5 + $0x3e0] sm:$0xff]  ;;  %v169_v61 = vld [vmem:[#allocation5 + $0x3d0] sm:$0xff] }
  0x52   :  { %546 = vmatprep.subr.bf16.mxu1 %v545_v0  ;;  %v565_v60 = vpack.c.bf16 %v174_v54, %v170_v53  ;;  %v173_v62 = vld [vmem:[#allocation5 + $0x3f0] sm:$0xff]  ;;  %v503_v63 = vpack.c.bf16 %v171_v59, %v167_v58  ;;  %v43_v1 = vld [vmem:[#allocation2] sm:$0xff]  ;;  %v46_v2 = vld [vmem:[#allocation2 + $0x18] sm:$0xff] }
  0x53   :  { %v567_v0 = vpack.c.bf16 %v173_v62, %v169_v61  ;;  %v45_v3 = vld [vmem:[#allocation2 + $0x10] sm:$0xff]  ;;  %v175_v7 = vld [vmem:[%s743_s2] sm:$0xf]  ;;  %s670_s2 = smov [#allocation7]  }
  0x54   :  { %484 = vmatpush1.bf16.msra.mxu0 %v483_v6  ;;  %v179_v6 = vsub.s32 0, %v178_v5  ;;  %v192_v14 = vrot.slane %v175_v7, %v191_v10  ;;  %s420_s13 = sshll.u32 %s670_s2, 4  ;;  %s421_s13 = int_to_ptr.vmem [resolvable:$true] %s420_s13 }
  0x55   :  { %548 = vmatpush1.bf16.msra.mxu1 %v547_v8  ;;  %486 = vmatprep.subr.bf16.mxu0 %v485_v9  ;;  %v187_v8 = vsub.s32 2, %v178_v5  ;;  %v183_v9 = vsub.s32 1, %v178_v5  ;;  %s636_s14 = scalar_lea.vmem %s421_s13, 1024  ;;  %p641_p3 = scmp.lt.s32.totalorder %s421_s13, %s421_s13 }
  0x56   :  { %550 = vmatprep.subr.bf16.mxu1 %v549_v13  ;;  %v180_v11 = vrot.slane %v175_v7, %v179_v6  ;;  %p637_p2 = scmp.ne.s32.totalorder %s421_s13, %s636_s14  ;;  %p642_p4 = scmp.lt.s32.totalorder %s636_s14, %s636_s14 }
  0x57   :  { %v188_v12 = vrot.slane %v175_v7, %v187_v8  ;;  %v184_v13 = vrot.slane %v175_v7, %v183_v9 }
  0x58   :  { %488 = vmatpush1.bf16.msra.mxu0 %v487_v19  ;;  %p643_p5 = por %p642_p4, %p641_p3 }
  0x59   :  { %552 = vmatpush1.bf16.msra.mxu1 %v551_v20  ;;  %490 = vmatprep.subr.bf16.mxu0 %v489_v21 }
  0x5a   :  { %554 = vmatprep.subr.bf16.mxu1 %v553_v25  ;;  %p644_p6 = pnand %p643_p5, %p637_p2 }
  0x5c   :  { %492 = vmatpush1.bf16.msra.mxu0 %v491_v31 }
  0x5d   :  { %556 = vmatpush1.bf16.msra.mxu1 %v555_v32  ;;  %494 = vmatprep.subr.bf16.mxu0 %v493_v33 }
  0x5e   :  { %558 = vmatprep.subr.bf16.mxu1 %v557_v37 }
  0x60   :  { %496 = vmatpush1.bf16.msra.mxu0 %v495_v43 }
  0x61   :  { %560 = vmatpush1.bf16.msra.mxu1 %v559_v44  ;;  %498 = vmatprep.subr.bf16.mxu0 %v497_v45 }
  0x62   :  { %562 = vmatprep.subr.bf16.mxu1 %v561_v49 }
  0x64   :  { %500 = vmatpush1.bf16.msra.mxu0 %v499_v55 }
  0x65   :  { %564 = vmatpush1.bf16.msra.mxu1 %v563_v56  ;;  %502 = vmatprep.subr.bf16.mxu0 %v501_v57 }
  0x66   :  { %566 = vmatprep.subr.bf16.mxu1 %v565_v60 }
  0x68   :  { %504 = vmatpush1.bf16.msra.mxu0 %v503_v63 }
  0x69   :  { %568 = vmatpush1.bf16.msra.mxu1 %v567_v0 }
  0x6b   :  { %262 = vmatmul.mubr.f32.vlgmr.msra.gmra.mrb[0].mxu0 %v43_v1 }
  0x6c   :  { %339 = vmatmul.mubr.f32.vlgmr.msra.gmra.mrb[0].mxu1 %v43_v1  ;;  %267 = vmatprep.mubr.f32.mxu0 %v46_v2 }
  0x6d   :  { %344 = vmatprep.mubr.f32.mxu1 %v46_v2 }
  0x6f   :  { %268 = vmatmul.mubr.f32.gmra.mrb[2].mxu0 %v45_v3 }
  0x70   :  { %345 = vmatmul.mubr.f32.gmra.mrb[2].mxu1 %v45_v3 }
 0x13e   :  { %v263_v15 = vpop.f32.mrb[0].mxu0 }
 0x13f   :  { %v264_v16 = vadd.f32 %v263_v15, %v180_v11  ;;  %v340_v17 = vpop.f32.mrb[0].mxu1  ;;  %v265_v18 = vpop.f32.mrb[1].mxu0 }
 0x140   :  { %v341_v19 = vadd.f32 %v340_v17, %v188_v12  ;;  %v266_v20 = vadd.f32 %v265_v18, %v184_v13  ;;  %v342_v21 = vpop.f32.mrb[1].mxu1 }
 0x141   :  { %v359_v22 = vmul.f32 1.442695, %v264_v16  ;;  %v343_v23 = vadd.f32 %v342_v21, %v192_v14  ;;  %vm351_vm0 = vcmp.gt.f32.partialorder %v264_v16, 0.0 }
 0x142   :  { %v363_v24 = vmul.f32 1.442695, %v341_v19  ;;  %v361_v25 = vmul.f32 1.442695, %v266_v20  ;;  %v269_v27 = vpop.f32.mrb[2].mxu0  ;;  %vm353_vm1 = vcmp.gt.f32.partialorder %v341_v19, 0.0 }
 0x143   :  { %576 = vpow2.f32 %v359_v22  ;;  %v365_v26 = vmul.f32 1.442695, %v343_v23  ;;  %v346_v28 = vpop.f32.mrb[2].mxu1  ;;  %v270_v29 = vadd.f32 %v269_v27, %v180_v11  ;;  %v271_v31 = vpop.f32.mrb[3].mxu0  ;;  %vm352_vm2 = vcmp.gt.f32.partialorder %v266_v20, 0.0 }
 0x144   :  { %578 = vpow2.f32 %v363_v24  ;;  %v347_v30 = vadd.f32 %v346_v28, %v188_v12  ;;  %v348_v32 = vpop.f32.mrb[3].mxu1  ;;  %v272_v33 = vadd.f32 %v271_v31, %v184_v13  ;;  %vm354_vm3 = vcmp.gt.f32.partialorder %v343_v23, 0.0 }
 0x145   :  { %580 = vpow2.f32 %v361_v25  ;;  %v721_v34 = vadd.f32 %v348_v32, %v192_v14  ;;  %v367_v35 = vmul.f32 1.442695, %v270_v29  ;;  %vm355_vm4 = vcmp.gt.f32.partialorder %v270_v29, 0.0 }
 0x146   :  { %582 = vpow2.f32 %v365_v26  ;;  %v371_v36 = vmul.f32 1.442695, %v347_v30  ;;  %v369_v37 = vmul.f32 1.442695, %v272_v33  ;;  %vm357_vm5 = vcmp.gt.f32.partialorder %v347_v30, 0.0 }
 0x147   :  { %584 = vpow2.f32 %v367_v35  ;;  %v373_v38 = vmul.f32 1.442695, %v721_v34  ;;  %vm356_vm6 = vcmp.gt.f32.partialorder %v272_v33, 0.0  ;;  %vm358_vm7 = vcmp.gt.f32.partialorder %v721_v34, 0.0 }
 0x148   :  { %586 = vpow2.f32 %v371_v36 }
 0x149   :  { %588 = vpow2.f32 %v369_v37 }
 0x14a   :  { %590 = vpow2.f32 %v373_v38 }
 0x14d   :  { %v577_v39 = vpop.eup %576 }
 0x14e   :  { %v579_v40 = vpop.eup %578  ;;  %v433_v41 = vadd.f32 -1.0, %v577_v39 }
 0x14f   :  { %v581_v42 = vpop.eup %580  ;;  %v435_v43 = vadd.f32 -1.0, %v579_v40 }
 0x150   :  { %v583_v44 = vpop.eup %582  ;;  %v383_v45 = vmul.f32 1.6732632, %v433_v41  ;;  %v434_v46 = vadd.f32 -1.0, %v581_v42 }
 0x151   :  { %v385_v47 = vmul.f32 1.6732632, %v435_v43  ;;  %v436_v48 = vadd.f32 -1.0, %v583_v44  ;;  %v585_v49 = vpop.eup %584 }
 0x152   :  { %v391_v50 = vsel %vm351_vm0, %v264_v16, %v383_v45  ;;  %v384_v51 = vmul.f32 1.6732632, %v434_v46  ;;  %v587_v52 = vpop.eup %586  ;;  %v437_v56 = vadd.f32 -1.0, %v585_v49 }
 0x153   :  { %v399_v53 = vmul.f32 1.050701, %v391_v50  ;;  %v393_v54 = vsel %vm353_vm1, %v341_v19, %v385_v47  ;;  %v386_v55 = vmul.f32 1.6732632, %v436_v48  ;;  %v589_v57 = vpop.eup %588  ;;  %v439_v60 = vadd.f32 -1.0, %v587_v52 }
 0x154   :  { %v401_v58 = vmul.f32 1.050701, %v393_v54  ;;  %v392_v59 = vsel %vm352_vm2, %v266_v20, %v384_v51  ;;  %v591_v61 = vpop.eup %590  ;;  %v387_v0 = vmul.f32 1.6732632, %v437_v56  ;;  %v438_v1 = vadd.f32 -1.0, %v589_v57 }
 0x155   :  { %407 = vst [vmem:[#allocation7] sm:$0xff] %v399_v53  ;;  %v400_v62 = vmul.f32 1.050701, %v392_v59  ;;  %v394_v63 = vsel %vm354_vm3, %v343_v23, %v386_v55  ;;  %v389_v3 = vmul.f32 1.6732632, %v439_v60  ;;  %v440_v4 = vadd.f32 -1.0, %v591_v61 }
 0x156   :  { %409 = vst [vmem:[#allocation7 + $0x10] sm:$0xff] %v401_v58  ;;  %v402_v2 = vmul.f32 1.050701, %v394_v63  ;;  %v395_v5 = vsel %vm355_vm4, %v270_v29, %v387_v0  ;;  %v388_v6 = vmul.f32 1.6732632, %v438_v1 }
 0x157   :  { %408 = vst [vmem:[#allocation7 + $0x8] sm:$0xff] %v400_v62  ;;  %v403_v7 = vmul.f32 1.050701, %v395_v5  ;;  %v397_v8 = vsel %vm357_vm5, %v347_v30, %v389_v3  ;;  %v390_v9 = vmul.f32 1.6732632, %v440_v4 }
 0x158   :  { %410 = vst [vmem:[#allocation7 + $0x18] sm:$0xff] %v402_v2  ;;  %v405_v10 = vmul.f32 1.050701, %v397_v8  ;;  %v396_v11 = vsel %vm356_vm6, %v272_v33, %v388_v6 }
 0x159   :  { %411 = vst [vmem:[#allocation7 + $0x20] sm:$0xff] %v403_v7  ;;  %v404_v12 = vmul.f32 1.050701, %v396_v11  ;;  %v398_v13 = vsel %vm358_vm7, %v721_v34, %v390_v9 }
 0x15a   :  { %413 = vst [vmem:[#allocation7 + $0x30] sm:$0xff] %v405_v10  ;;  %v406_v14 = vmul.f32 1.050701, %v398_v13 }
 0x15b   :  { %412 = vst [vmem:[#allocation7 + $0x28] sm:$0xff] %v404_v12 }
 0x15c   :  { %414 = vst [vmem:[#allocation7 + $0x38] sm:$0xff] %v406_v14 }
 0x15d   :  { %647 = shalt.err (!%p644_p6)
}
 0x15e   :  { %s648_s17 = scalar_lea.hbm %s744_s3, 1024 }
 0x15f   :  { %p649_p7 = scmp.ne.s32.totalorder %s744_s3, %s648_s17  ;;  %p652_p8 = scmp.lt.u32.totalorder %s648_s17, %s744_s3 }
 0x161   :  { %p654_p9 = pnand %p652_p8, %p649_p7 }
 0x163   :  { %657 = shalt.err (!%p654_p9)
}
 0x164   :  { %426 = dma.vmem_to_hbm [thread:$0]  %s421_s13, 1024, %s744_s3, [#allocation4], %s668_s0, %s668_s0, %s669_s9  }
 0x165   :  { %662 = dma.done.wait [#allocation4], 1024  }
 0x166   :  { %663 = vsyncadd [#allocation4], 4294966272 }
 0x167   :  { %430 = vsyncpa [#allocation3], 1 }
 0x168   :  { %431 = vsyncpa [#allocation6], 1 }
 0x169   :  { %432 = vsyncpa [#allocation4], 1 }

</bundles_post_ra>
